<compile_context>
chip_gen: v6e
topology: v6e:2x2x1
jax: 0.10.0
libtpu: 0.0.40
codegen_flags: <defaults>
</compile_context>

<pallas_src>
import functools

import jax
import jax.numpy as jnp
from jax.experimental import pallas as pl
from jax.experimental.pallas import tpu as pltpu

K_IN = 28 * 28        # 784 input features (full-extent last axis; no padding)
H1, H2 = 512, 256
N_PAD = 128           # padded width of the last layer (only column 0 is real)


def _round_up(x, m):
    return (x + m - 1) // m * m


def _leaky_relu(x, slope=0.01):
    return jnp.where(x > 0, x, slope * x)


def _sigmoid(x):
    # tanh-form sigmoid: numerically stable, single EUP transcendental.
    return 0.5 * (jnp.tanh(0.5 * x) + 1.0)


def _mlp_kernel(x_ref, w1_ref, b1_ref, w2_ref, b2_ref, w3_ref, b3_ref, o_ref):
    # One batch tile per grid step.  f32 -> bf16 cast on the VPU (hidden under
    # the MXU), three fused matmuls with fp32 accumulation, LeakyReLU on the
    # VPU, sigmoid on the EUP.  Only column 0 of the padded last layer is real.
    x = x_ref[...].astype(jnp.bfloat16)                                    # (tb, 784)
    h1 = jnp.dot(x, w1_ref[...], preferred_element_type=jnp.float32) + b1_ref[...]
    h1 = _leaky_relu(h1).astype(jnp.bfloat16)                              # (tb, 512)
    h2 = jnp.dot(h1, w2_ref[...], preferred_element_type=jnp.float32) + b2_ref[...]
    h2 = _leaky_relu(h2).astype(jnp.bfloat16)                              # (tb, 256)
    h3 = jnp.dot(h2, w3_ref[...], preferred_element_type=jnp.float32) + b3_ref[...]
    o_ref[...] = _sigmoid(h3[:, 0:1]).astype(o_ref.dtype)                  # (tb, 1)


def _choose_tile(batch, block_b):
    """Batch-tile rows: multiple of 8, >=256 for large batches, >=2 grid steps
    whenever the batch allows it (keeps both v7x TensorCores busy)."""
    if batch <= 256:
        return _round_up(batch, 8)            # single step, (8, *)-aligned
    bb = _round_up(min(block_b, _round_up(batch, 256)), 256)
    if pl.cdiv(batch, bb) == 1:
        # Split into two steps; each still has >=256 rows, so the extra
        # per-step overhead is negligible on single-TC v5e/v6e too.
        bb = max(256, _round_up(pl.cdiv(batch, 2), 128))
    return bb


def prepare_params(params):
    """One-time conversion: bf16 weights, last layer padded to 128 columns."""
    w1, b1, w2, b2, w3, b3 = params
    w1p = w1.astype(jnp.bfloat16)                                      # (784, 512)
    w2p = w2.astype(jnp.bfloat16)                                      # (512, 256)
    w3p = jnp.pad(w3, ((0, 0), (0, N_PAD - 1))).astype(jnp.bfloat16)   # (256, 128)
    b3p = jnp.pad(b3, ((0, 0), (0, N_PAD - 1)))                        # (1, 128) f32
    return (w1p, b1, w2p, b2, w3p, b3p)


@functools.partial(jax.jit, static_argnames=("block_b",))
def discriminator_forward(img, prepared_params, block_b=1024):
    """img: (B, 1, 28, 28) float32 NCHW -> (B, 1) sigmoid scores (float32)."""
    w1, b1, w2, b2, w3p, b3p = prepared_params
    B = img.shape[0]
    x = img.reshape(B, K_IN)              # free view; kernel reads f32 directly

    bb = _choose_tile(B, block_b)
    grid = (pl.cdiv(B, bb),)

    # Grid-invariant operands: full-array blocks, single-buffered (fetched once
    # and resident in VMEM; no wasted second buffer).
    def const_spec(shape):
        return pl.BlockSpec(shape, lambda i: (0,) * len(shape),
                            pipeline_mode=pl.Buffered(1))

    flops = 2 * B * (K_IN * H1 + H1 * H2 + H2 * N_PAD)
    w_bytes = (w1.size + w2.size + w3p.size) * 2 + (b1.size + b2.size + b3p.size) * 4
    cost = pl.CostEstimate(
        flops=flops,
        transcendentals=B,
        bytes_accessed=B * K_IN * 4 + B * 4 + w_bytes,
    )

    out = pl.pallas_call(
        _mlp_kernel,
        out_shape=jax.ShapeDtypeStruct((B, 1), jnp.float32),
        grid_spec=pltpu.PrefetchScalarGridSpec(
            num_scalar_prefetch=0,
            grid=grid,
            in_specs=[
                pl.BlockSpec((bb, K_IN), lambda i: (i, 0)),        # x tile (f32)
                const_spec(w1.shape), const_spec(b1.shape),
                const_spec(w2.shape), const_spec(b2.shape),
                const_spec(w3p.shape), const_spec(b3p.shape),
            ],
            out_specs=pl.BlockSpec((bb, 1), lambda i: (i, 0)),
        ),
        compiler_params=pltpu.CompilerParams(
            dimension_semantics=("parallel",),       # batch axis -> megacore on v7x
            vmem_limit_bytes=32 * 1024 * 1024,       # large tiles compile on v5e too
        ),
        cost_estimate=cost,
    )(x, w1, b1, w2, b2, w3p, b3p)

    return out


def init_params(key):
    """nn.Linear-style init; weights stored as (in, out), biases as (1, out)."""
    ks = jax.random.split(key, 6)

    def linear(kw, kb, fan_in, fan_out):
        bound = 1.0 / jnp.sqrt(fan_in)
        w = jax.random.uniform(kw, (fan_in, fan_out), jnp.float32, -bound, bound)
        b = jax.random.uniform(kb, (1, fan_out), jnp.float32, -bound, bound)
        return w, b

    w1, b1 = linear(ks[0], ks[1], K_IN, H1)
    w2, b2 = linear(ks[2], ks[3], H1, H2)
    w3, b3 = linear(ks[4], ks[5], H2, 1)
    return (w1, b1, w2, b2, w3, b3)


def reference_forward_matched(img, params):
    """Same bf16-input / fp32-accumulate numerics as the kernel."""
    w1, b1, w2, b2, w3, b3 = params
    x = img.reshape(img.shape[0], -1).astype(jnp.bfloat16)
    h = jnp.dot(x, w1.astype(jnp.bfloat16), preferred_element_type=jnp.float32) + b1
    h = _leaky_relu(h).astype(jnp.bfloat16)
    h = jnp.dot(h, w2.astype(jnp.bfloat16), preferred_element_type=jnp.float32) + b2
    h = _leaky_relu(h).astype(jnp.bfloat16)
    h3 = jnp.dot(h, w3.astype(jnp.bfloat16), preferred_element_type=jnp.float32) + b3
    return _sigmoid(h3)


def reference_forward_fp32(img, params):
    w1, b1, w2, b2, w3, b3 = params
    x = img.reshape(img.shape[0], -1)
    h = _leaky_relu(x @ w1 + b1)
    h = _leaky_relu(h @ w2 + b2)
    return jax.nn.sigmoid(h @ w3 + b3)


if __name__ == "__main__":
    key = jax.random.PRNGKey(0)
    k_param, k_img, k_img2 = jax.random.split(key, 3)
    params = init_params(k_param)
    pparams = prepare_params(params)

    # Small deterministic input: batch=8 NCHW images (8, 1, 28, 28).
    img = jax.random.normal(k_img, (8, 1, 28, 28), dtype=jnp.float32)
    out = jax.block_until_ready(discriminator_forward(img, pparams))
    assert out.shape == (8, 1), out.shape

    ref_m = reference_forward_matched(img, params)
    ref_f = reference_forward_fp32(img, params)
    assert jnp.allclose(out, ref_m, atol=1e-3, rtol=1e-3), (
        f"matched-ref max abs err {float(jnp.max(jnp.abs(out - ref_m)))}")
    assert jnp.allclose(out, ref_f, atol=5e-2, rtol=5e-2), (
        f"fp32-ref max abs err {float(jnp.max(jnp.abs(out - ref_f)))}")

    # Larger batch exercising the multi-tile (grid = 2) pipelined path.
    img2 = jax.random.normal(k_img2, (512, 1, 28, 28), dtype=jnp.float32)
    out2 = jax.block_until_ready(discriminator_forward(img2, pparams))
    assert out2.shape == (512, 1), out2.shape
    ref2 = reference_forward_matched(img2, params)
    assert jnp.allclose(out2, ref2, atol=1e-3, rtol=1e-3), (
        f"batch-512 max abs err {float(jnp.max(jnp.abs(out2 - ref2)))}")

    print("KERNEL_OK")
</pallas_src>

<mosaic_0001>
module attributes {stable_mosaic.version = 11 : i64} {
  func.func @_mlp_kernel(%arg0: i32, %arg1: memref<8x784xf32, #tpu.memory_space<vmem>>, %arg2: memref<784x512xbf16, #tpu.memory_space<vmem>>, %arg3: memref<1x512xf32, #tpu.memory_space<vmem>>, %arg4: memref<512x256xbf16, #tpu.memory_space<vmem>>, %arg5: memref<1x256xf32, #tpu.memory_space<vmem>>, %arg6: memref<256x128xbf16, #tpu.memory_space<vmem>>, %arg7: memref<1x128xf32, #tpu.memory_space<vmem>>, %arg8: memref<8x1xf32, #tpu.memory_space<vmem>>) attributes {dimension_semantics = [#tpu.dimension_semantics<parallel>], iteration_bounds = array<i64: 1>, scalar_prefetch = 0 : i64, scratch_operands = 0 : i64, tpu.core_type = #tpu.core_type<tc>, window_params = [{transform_indices = @transform_0, window_bounds = array<i64: 8, 784>}, {pipeline_mode = #tpu.pipeline_mode<synchronous>, transform_indices = @transform_1, window_bounds = array<i64: 784, 512>}, {pipeline_mode = #tpu.pipeline_mode<synchronous>, transform_indices = @transform_2, window_bounds = array<i64: 1, 512>}, {pipeline_mode = #tpu.pipeline_mode<synchronous>, transform_indices = @transform_3, window_bounds = array<i64: 512, 256>}, {pipeline_mode = #tpu.pipeline_mode<synchronous>, transform_indices = @transform_4, window_bounds = array<i64: 1, 256>}, {pipeline_mode = #tpu.pipeline_mode<synchronous>, transform_indices = @transform_5, window_bounds = array<i64: 256, 128>}, {pipeline_mode = #tpu.pipeline_mode<synchronous>, transform_indices = @transform_6, window_bounds = array<i64: 1, 128>}, {transform_indices = @transform_7, window_bounds = array<i64: 8, 1>}]} {
    %c0 = arith.constant 0 : index
    %c0_0 = arith.constant 0 : index
    %0 = vector.load %arg1[%c0, %c0_0] : memref<8x784xf32, #tpu.memory_space<vmem>>, vector<8x784xf32>
    %1 = arith.truncf %0 : vector<8x784xf32> to vector<8x784xbf16>
    %c0_1 = arith.constant 0 : index
    %c0_2 = arith.constant 0 : index
    %2 = vector.load %arg2[%c0_1, %c0_2] : memref<784x512xbf16, #tpu.memory_space<vmem>>, vector<784x512xbf16>
    %cst = arith.constant dense<0.000000e+00> : vector<8x512xf32>
    %3 = tpu.matmul %1, %2, %cst {dimension_numbers = #tpu.dot_dimension_numbers<[1], [0], [0], [1], [0, 0, 1, 1], [], []>} : vector<8x784xbf16>, vector<784x512xbf16>, vector<8x512xf32> -> vector<8x512xf32>
    %c0_3 = arith.constant 0 : index
    %c0_4 = arith.constant 0 : index
    %4 = vector.load %arg3[%c0_3, %c0_4] : memref<1x512xf32, #tpu.memory_space<vmem>>, vector<1x512xf32>
    %5 = vector.broadcast %4 : vector<1x512xf32> to vector<8x512xf32>
    %6 = arith.addf %3, %5 : vector<8x512xf32>
    %cst_5 = arith.constant 0.000000e+00 : f32
    %7 = vector.broadcast %cst_5 : f32 to vector<8x512xf32>
    %8 = arith.cmpf ogt, %6, %7 : vector<8x512xf32>
    %cst_6 = arith.constant 0.00999999977 : f32
    %9 = vector.broadcast %cst_6 : f32 to vector<8x512xf32>
    %10 = arith.mulf %9, %6 : vector<8x512xf32>
    %11 = arith.select %8, %6, %10 : vector<8x512xi1>, vector<8x512xf32>
    %12 = arith.truncf %11 : vector<8x512xf32> to vector<8x512xbf16>
    %c0_7 = arith.constant 0 : index
    %c0_8 = arith.constant 0 : index
    %13 = vector.load %arg4[%c0_7, %c0_8] : memref<512x256xbf16, #tpu.memory_space<vmem>>, vector<512x256xbf16>
    %cst_9 = arith.constant dense<0.000000e+00> : vector<8x256xf32>
    %14 = tpu.matmul %12, %13, %cst_9 {dimension_numbers = #tpu.dot_dimension_numbers<[1], [0], [0], [1], [0, 0, 1, 1], [], []>} : vector<8x512xbf16>, vector<512x256xbf16>, vector<8x256xf32> -> vector<8x256xf32>
    %c0_10 = arith.constant 0 : index
    %c0_11 = arith.constant 0 : index
    %15 = vector.load %arg5[%c0_10, %c0_11] : memref<1x256xf32, #tpu.memory_space<vmem>>, vector<1x256xf32>
    %16 = vector.broadcast %15 : vector<1x256xf32> to vector<8x256xf32>
    %17 = arith.addf %14, %16 : vector<8x256xf32>
    %cst_12 = arith.constant 0.000000e+00 : f32
    %18 = vector.broadcast %cst_12 : f32 to vector<8x256xf32>
    %19 = arith.cmpf ogt, %17, %18 : vector<8x256xf32>
    %cst_13 = arith.constant 0.00999999977 : f32
    %20 = vector.broadcast %cst_13 : f32 to vector<8x256xf32>
    %21 = arith.mulf %20, %17 : vector<8x256xf32>
    %22 = arith.select %19, %17, %21 : vector<8x256xi1>, vector<8x256xf32>
    %23 = arith.truncf %22 : vector<8x256xf32> to vector<8x256xbf16>
    %c0_14 = arith.constant 0 : index
    %c0_15 = arith.constant 0 : index
    %24 = vector.load %arg6[%c0_14, %c0_15] : memref<256x128xbf16, #tpu.memory_space<vmem>>, vector<256x128xbf16>
    %cst_16 = arith.constant dense<0.000000e+00> : vector<8x128xf32>
    %25 = tpu.matmul %23, %24, %cst_16 {dimension_numbers = #tpu.dot_dimension_numbers<[1], [0], [0], [1], [0, 0, 1, 1], [], []>} : vector<8x256xbf16>, vector<256x128xbf16>, vector<8x128xf32> -> vector<8x128xf32>
    %c0_17 = arith.constant 0 : index
    %c0_18 = arith.constant 0 : index
    %26 = vector.load %arg7[%c0_17, %c0_18] : memref<1x128xf32, #tpu.memory_space<vmem>>, vector<1x128xf32>
    %27 = vector.broadcast %26 : vector<1x128xf32> to vector<8x128xf32>
    %28 = arith.addf %25, %27 : vector<8x128xf32>
    %29 = vector.extract_strided_slice %28 {offsets = [0, 0], sizes = [8, 1], strides = [1, 1]} : vector<8x128xf32> to vector<8x1xf32>
    %cst_19 = arith.constant 5.000000e-01 : f32
    %30 = vector.broadcast %cst_19 : f32 to vector<8x1xf32>
    %31 = arith.mulf %30, %29 : vector<8x1xf32>
    %32 = math.tanh %31 : vector<8x1xf32>
    %cst_20 = arith.constant 1.000000e+00 : f32
    %33 = vector.broadcast %cst_20 : f32 to vector<8x1xf32>
    %34 = arith.addf %32, %33 : vector<8x1xf32>
    %cst_21 = arith.constant 5.000000e-01 : f32
    %35 = vector.broadcast %cst_21 : f32 to vector<8x1xf32>
    %36 = arith.mulf %35, %34 : vector<8x1xf32>
    %c0_22 = arith.constant 0 : index
    %c0_23 = arith.constant 0 : index
    %37 = vector.load %arg8[%c0_22, %c0_23] : memref<8x1xf32, #tpu.memory_space<vmem>>, vector<8x1xf32>
    tpu.vector_store %arg8[%c0_22, %c0_23], %36 {strides = array<i32>} : memref<8x1xf32, #tpu.memory_space<vmem>>, vector<8x1xf32>,
    return
  }
  func.func @transform_0(%arg0: i32) -> (i32, i32) {
    %c0_i32 = arith.constant 0 : i32
    %c0_i32_0 = arith.constant 0 : i32
    return %arg0, %c0_i32 : i32, i32
  }
  func.func @transform_1(%arg0: i32) -> (i32, i32) {
    %c0_i32 = arith.constant 0 : i32
    %c0_i32_0 = arith.constant 0 : i32
    %c0_i32_1 = arith.constant 0 : i32
    return %c0_i32, %c0_i32_0 : i32, i32
  }
  func.func @transform_2(%arg0: i32) -> (i32, i32) {
    %c0_i32 = arith.constant 0 : i32
    %c0_i32_0 = arith.constant 0 : i32
    %c0_i32_1 = arith.constant 0 : i32
    return %c0_i32, %c0_i32_0 : i32, i32
  }
  func.func @transform_3(%arg0: i32) -> (i32, i32) {
    %c0_i32 = arith.constant 0 : i32
    %c0_i32_0 = arith.constant 0 : i32
    %c0_i32_1 = arith.constant 0 : i32
    return %c0_i32, %c0_i32_0 : i32, i32
  }
  func.func @transform_4(%arg0: i32) -> (i32, i32) {
    %c0_i32 = arith.constant 0 : i32
    %c0_i32_0 = arith.constant 0 : i32
    %c0_i32_1 = arith.constant 0 : i32
    return %c0_i32, %c0_i32_0 : i32, i32
  }
  func.func @transform_5(%arg0: i32) -> (i32, i32) {
    %c0_i32 = arith.constant 0 : i32
    %c0_i32_0 = arith.constant 0 : i32
    %c0_i32_1 = arith.constant 0 : i32
    return %c0_i32, %c0_i32_0 : i32, i32
  }
  func.func @transform_6(%arg0: i32) -> (i32, i32) {
    %c0_i32 = arith.constant 0 : i32
    %c0_i32_0 = arith.constant 0 : i32
    %c0_i32_1 = arith.constant 0 : i32
    return %c0_i32, %c0_i32_0 : i32, i32
  }
  func.func @transform_7(%arg0: i32) -> (i32, i32) {
    %c0_i32 = arith.constant 0 : i32
    %c0_i32_0 = arith.constant 0 : i32
    return %arg0, %c0_i32 : i32, i32
  }
}

</mosaic_0001>

<bundles_post_ra>
// kernel: discriminator_forward.1
= control target key start
LH: loop header
LB: loop body
LE: loop exit
PB: predicated region body
PF: predicated region fallthrough
CT: control target
= control target key end

     0   :  { %12 = vsyncpa [#allocation3], 0  ;;  %s3008_s24 = smov [#allocation2]   ;;  %s3374_s0 = inlined_call_operand.vmem [shape: f32[8,784], index: 0, kind: input, shape index: {}]   ;;  %s3375_s1 = inlined_call_operand.hbm [shape: bf16[784,512], index: 1, kind: input, shape index: {}]   ;;  %s3376_s2 = inlined_call_operand.vmem [shape: f32[1,512], index: 2, kind: input, shape index: {}]   ;;  %s3377_s3 = inlined_call_operand.vmem [shape: bf16[512,256], index: 3, kind: input, shape index: {}]   ;;  %s3378_s4 = inlined_call_operand.vmem [shape: f32[1,256], index: 4, kind: input, shape index: {}]   ;;  %s3379_s5 = inlined_call_operand.vmem [shape: bf16[256,128], index: 5, kind: input, shape index: {}]   ;;  %s3380_s6 = inlined_call_operand.vmem [shape: f32[1,128], index: 6, kind: input, shape index: {}]   ;;  %s3381_s7 = inlined_call_operand.vmem [shape: f32[8,1], index: 7, kind: output, shape index: {}]  }
   0x1   :  { %s20_s25 = sshll.u32 %s3008_s24, 4  ;;  %s21_s25 = int_to_ptr.vmem [resolvable:$true] %s20_s25 }
   0x2   :  { %s2994_s26 = scalar_lea.vmem %s21_s25, 25088  ;;  %p2999_p1 = scmp.lt.s32.totalorder %s21_s25, %s21_s25 }
   0x3   :  { %p2995_p0 = scmp.ne.s32.totalorder %s21_s25, %s2994_s26  ;;  %p3000_p2 = scmp.lt.s32.totalorder %s2994_s26, %s2994_s26 }
   0x5   :  { %p3001_p3 = por %p3000_p2, %p2999_p1 }
   0x7   :  { %p3002_p4 = pnand %p3001_p3, %p2995_p0 }
   0x9   :  { %3005 = shalt.err (!%p3002_p4)
}
   0xa   :  { %s3009_s27 = smov 256   ;;  %s3010_s28 = smov 16  }
   0xb   :  { %26 = dma.hbm_to_vmem [thread:$0]  %s3375_s1, 25088, %s21_s25, [#allocation3], %s3009_s27, %s3009_s27, %s3010_s28  }
   0xc   :  { %3006 = dma.done.wait [#allocation3], 25088  }
   0xd   :  { %3007 = vsyncadd [#allocation3], 4294942208  ;;  %v2578_v0 = vld [vmem:[#allocation2 + $0xe4] ss:$16 sps:$4 sm:$0xff]   ;;  %v2582_v2 = vld [vmem:[#allocation2 + $0xe0] ss:$16 sps:$4 sm:$0xff]  }
   0xe   :  { %v2580_v1 = vld [vmem:[#allocation2 + $0x2e4] ss:$16 sps:$4 sm:$0xff]   ;;  %1257 = vmatprep.subr.bf16.mxu0 %v2578_v0  ;;  %v2583_v3 = vld [vmem:[#allocation2 + $0x2e0] ss:$16 sps:$4 sm:$0xff]   ;;  %v42_v46 = vld [vmem:[%s3374_s0 + $0x8] sm:$0xff]  ;;  %vm1253_vm0 = vcmask 130048  }
   0xf   :  { %1298 = vmatprep.subr.bf16.mxu1 %v2580_v1  ;;  %v2584_v4 = vld [vmem:[#allocation2 + $0xc4] ss:$16 sps:$4 sm:$0xff]   ;;  %1258 = vmatpush1.bf16.msra.mxu0 %v2582_v2  ;;  %v2588_v6 = vld [vmem:[#allocation2 + $0xc0] ss:$16 sps:$4 sm:$0xff]   ;;  %v3058_v49 = vpack.c.bf16 %v42_v46, %v42_v46  ;;  %v44_v50 = vld [vmem:[%s3374_s0 + $0x18] sm:$0xff]  ;;  %vm2266_vm7 = vcmask 7168  }
  0x10   :  { %1299 = vmatpush1.bf16.msra.mxu1 %v2583_v3  ;;  %v2586_v5 = vld [vmem:[#allocation2 + $0x2c4] ss:$16 sps:$4 sm:$0xff]   ;;  %1259 = vmatprep.subr.bf16.mxu0 %v2584_v4  ;;  %v2589_v7 = vld [vmem:[#allocation2 + $0x2c0] ss:$16 sps:$4 sm:$0xff]   ;;  %v3063_v52 = vpack.c.bf16 %v44_v50, %v44_v50 }
  0x11   :  { %1300 = vmatprep.subr.bf16.mxu1 %v2586_v5  ;;  %v2590_v8 = vld [vmem:[#allocation2 + $0xa4] ss:$16 sps:$4 sm:$0xff]   ;;  %v2594_v10 = vld [vmem:[#allocation2 + $0xa0] ss:$16 sps:$4 sm:$0xff]   ;;  %1289 = vmatprep.mubr.bf16.mxu0 %v3058_v49 }
  0x12   :  { %v2592_v9 = vld [vmem:[#allocation2 + $0x2a4] ss:$16 sps:$4 sm:$0xff]   ;;  %v2595_v11 = vld [vmem:[#allocation2 + $0x2a0] ss:$16 sps:$4 sm:$0xff]   ;;  %1330 = vmatprep.mubr.bf16.mxu1 %v3063_v52 }
  0x13   :  { %1260 = vmatpush1.bf16.msra.mxu0 %v2588_v6  ;;  %v2596_v12 = vld [vmem:[#allocation2 + $0x84] ss:$16 sps:$4 sm:$0xff]   ;;  %v2600_v14 = vld [vmem:[#allocation2 + $0x80] ss:$16 sps:$4 sm:$0xff]  }
  0x14   :  { %1301 = vmatpush1.bf16.msra.mxu1 %v2589_v7  ;;  %1261 = vmatprep.subr.bf16.mxu0 %v2590_v8  ;;  %v2598_v13 = vld [vmem:[#allocation2 + $0x284] ss:$16 sps:$4 sm:$0xff]   ;;  %v2601_v15 = vld [vmem:[#allocation2 + $0x280] ss:$16 sps:$4 sm:$0xff]  }
  0x15   :  { %1302 = vmatprep.subr.bf16.mxu1 %v2592_v9  ;;  %v2602_v16 = vld [vmem:[#allocation2 + $0x64] ss:$16 sps:$4 sm:$0xff]   ;;  %v2606_v18 = vld [vmem:[#allocation2 + $0x60] ss:$16 sps:$4 sm:$0xff]  }
  0x16   :  { %v2604_v17 = vld [vmem:[#allocation2 + $0x264] ss:$16 sps:$4 sm:$0xff]   ;;  %v2607_v19 = vld [vmem:[#allocation2 + $0x260] ss:$16 sps:$4 sm:$0xff]  }
  0x17   :  { %1262 = vmatpush1.bf16.msra.mxu0 %v2594_v10  ;;  %v2608_v20 = vld [vmem:[#allocation2 + $0x44] ss:$16 sps:$4 sm:$0xff]   ;;  %v2612_v22 = vld [vmem:[#allocation2 + $0x40] ss:$16 sps:$4 sm:$0xff]  }
  0x18   :  { %1303 = vmatpush1.bf16.msra.mxu1 %v2595_v11  ;;  %1263 = vmatprep.subr.bf16.mxu0 %v2596_v12  ;;  %v2610_v21 = vld [vmem:[#allocation2 + $0x244] ss:$16 sps:$4 sm:$0xff]   ;;  %v2613_v23 = vld [vmem:[#allocation2 + $0x240] ss:$16 sps:$4 sm:$0xff]  }
  0x19   :  { %1304 = vmatprep.subr.bf16.mxu1 %v2598_v13  ;;  %v2614_v24 = vld [vmem:[#allocation2 + $0x24] ss:$16 sps:$4 sm:$0xff]   ;;  %v2618_v26 = vld [vmem:[#allocation2 + $0x20] ss:$16 sps:$4 sm:$0xff]   ;;  %v2685_v13 = vld [vmem:[#allocation2 + $0xec] ss:$16 sps:$4 sm:$0xff]  }
  0x1a   :  { %v2616_v25 = vld [vmem:[#allocation2 + $0x224] ss:$16 sps:$4 sm:$0xff]   ;;  %v2619_v27 = vld [vmem:[#allocation2 + $0x220] ss:$16 sps:$4 sm:$0xff]  }
  0x1b   :  { %1264 = vmatpush1.bf16.msra.mxu0 %v2600_v14  ;;  %v2620_v28 = vld [vmem:[#allocation2 + $0x4] ss:$16 sps:$4 sm:$0xff]   ;;  %v2624_v30 = vld [vmem:[#allocation2] ss:$16 sps:$4 sm:$0xff]  }
  0x1c   :  { %1305 = vmatpush1.bf16.msra.mxu1 %v2601_v15  ;;  %1265 = vmatprep.subr.bf16.mxu0 %v2602_v16  ;;  %v2622_v29 = vld [vmem:[#allocation2 + $0x204] ss:$16 sps:$4 sm:$0xff]   ;;  %v2625_v31 = vld [vmem:[#allocation2 + $0x200] ss:$16 sps:$4 sm:$0xff]   ;;  %v3011_v16 = vmov 0  }
  0x1d   :  { %1306 = vmatprep.subr.bf16.mxu1 %v2604_v17  ;;  %v2626_v32 = vld [vmem:[#allocation2 + $0x1e4] ss:$16 sps:$4 sm:$0xff]   ;;  %v2630_v34 = vld [vmem:[#allocation2 + $0x1e0] ss:$16 sps:$4 sm:$0xff]  }
  0x1e   :  { %v2628_v33 = vld [vmem:[#allocation2 + $0x3e4] ss:$16 sps:$4 sm:$0xff]   ;;  %v2631_v35 = vld [vmem:[#allocation2 + $0x3e0] ss:$16 sps:$4 sm:$0xff]  }
  0x1f   :  { %1266 = vmatpush1.bf16.msra.mxu0 %v2606_v18  ;;  %v2632_v36 = vld [vmem:[#allocation2 + $0x1c4] ss:$16 sps:$4 sm:$0xff]   ;;  %v2636_v38 = vld [vmem:[#allocation2 + $0x1c0] ss:$16 sps:$4 sm:$0xff]   ;;  %v2683_v18 = vld [vmem:[#allocation2 + $0xe8] ss:$16 sps:$4 sm:$0xff]  }
  0x20   :  { %1307 = vmatpush1.bf16.msra.mxu1 %v2607_v19  ;;  %1267 = vmatprep.subr.bf16.mxu0 %v2608_v20  ;;  %v2634_v37 = vld [vmem:[#allocation2 + $0x3c4] ss:$16 sps:$4 sm:$0xff]   ;;  %v2637_v39 = vld [vmem:[#allocation2 + $0x3c0] ss:$16 sps:$4 sm:$0xff]  }
  0x21   :  { %1308 = vmatprep.subr.bf16.mxu1 %v2610_v21  ;;  %v2638_v40 = vld [vmem:[#allocation2 + $0x1a4] ss:$16 sps:$4 sm:$0xff]   ;;  %v2642_v42 = vld [vmem:[#allocation2 + $0x1a0] ss:$16 sps:$4 sm:$0xff]   ;;  %v2691_v21 = vld [vmem:[#allocation2 + $0xcc] ss:$16 sps:$4 sm:$0xff]  }
  0x22   :  { %v2640_v41 = vld [vmem:[#allocation2 + $0x3a4] ss:$16 sps:$4 sm:$0xff]   ;;  %v2643_v43 = vld [vmem:[#allocation2 + $0x3a0] ss:$16 sps:$4 sm:$0xff]  }
  0x23   :  { %1268 = vmatpush1.bf16.msra.mxu0 %v2612_v22  ;;  %v2644_v44 = vld [vmem:[#allocation2 + $0x184] ss:$16 sps:$4 sm:$0xff]   ;;  %v2648_v47 = vld [vmem:[#allocation2 + $0x180] ss:$16 sps:$4 sm:$0xff]  }
  0x24   :  { %1309 = vmatpush1.bf16.msra.mxu1 %v2613_v23  ;;  %1269 = vmatprep.subr.bf16.mxu0 %v2614_v24  ;;  %v2646_v45 = vld [vmem:[#allocation2 + $0x384] ss:$16 sps:$4 sm:$0xff]   ;;  %v2649_v48 = vld [vmem:[#allocation2 + $0x380] ss:$16 sps:$4 sm:$0xff]   ;;  %v2689_v23 = vld [vmem:[#allocation2 + $0xc8] ss:$16 sps:$4 sm:$0xff]  }
  0x25   :  { %1310 = vmatprep.subr.bf16.mxu1 %v2616_v25  ;;  %v2650_v51 = vld [vmem:[#allocation2 + $0x164] ss:$16 sps:$4 sm:$0xff]   ;;  %v2654_v54 = vld [vmem:[#allocation2 + $0x160] ss:$16 sps:$4 sm:$0xff]   ;;  %v2697_v25 = vld [vmem:[#allocation2 + $0xac] ss:$16 sps:$4 sm:$0xff]  }
  0x26   :  { %v2652_v53 = vld [vmem:[#allocation2 + $0x364] ss:$16 sps:$4 sm:$0xff]   ;;  %v2655_v55 = vld [vmem:[#allocation2 + $0x360] ss:$16 sps:$4 sm:$0xff]  }
  0x27   :  { %1270 = vmatpush1.bf16.msra.mxu0 %v2618_v26  ;;  %v2656_v56 = vld [vmem:[#allocation2 + $0x144] ss:$16 sps:$4 sm:$0xff]   ;;  %v2660_v58 = vld [vmem:[#allocation2 + $0x140] ss:$16 sps:$4 sm:$0xff]  }
  0x28   :  { %1311 = vmatpush1.bf16.msra.mxu1 %v2619_v27  ;;  %1271 = vmatprep.subr.bf16.mxu0 %v2620_v28  ;;  %v2658_v57 = vld [vmem:[#allocation2 + $0x344] ss:$16 sps:$4 sm:$0xff]   ;;  %v2661_v59 = vld [vmem:[#allocation2 + $0x340] ss:$16 sps:$4 sm:$0xff]   ;;  %v2695_v27 = vld [vmem:[#allocation2 + $0xa8] ss:$16 sps:$4 sm:$0xff]  }
  0x29   :  { %1312 = vmatprep.subr.bf16.mxu1 %v2622_v29  ;;  %v2662_v60 = vld [vmem:[#allocation2 + $0x124] ss:$16 sps:$4 sm:$0xff]   ;;  %v2666_v62 = vld [vmem:[#allocation2 + $0x120] ss:$16 sps:$4 sm:$0xff]   ;;  %v2703_v29 = vld [vmem:[#allocation2 + $0x8c] ss:$16 sps:$4 sm:$0xff]  }
  0x2a   :  { %v2664_v61 = vld [vmem:[#allocation2 + $0x324] ss:$16 sps:$4 sm:$0xff]   ;;  %v2667_v63 = vld [vmem:[#allocation2 + $0x320] ss:$16 sps:$4 sm:$0xff]  }
  0x2b   :  { %1272 = vmatpush1.bf16.msra.mxu0 %v2624_v30  ;;  %v2668_v0 = vld [vmem:[#allocation2 + $0x104] ss:$16 sps:$4 sm:$0xff]   ;;  %v2672_v2 = vld [vmem:[#allocation2 + $0x100] ss:$16 sps:$4 sm:$0xff]  }
  0x2c   :  { %1313 = vmatpush1.bf16.msra.mxu1 %v2625_v31  ;;  %1273 = vmatprep.subr.bf16.mxu0 %v2626_v32  ;;  %v2670_v1 = vld [vmem:[#allocation2 + $0x304] ss:$16 sps:$4 sm:$0xff]   ;;  %v2673_v3 = vld [vmem:[#allocation2 + $0x300] ss:$16 sps:$4 sm:$0xff]   ;;  %v2701_v31 = vld [vmem:[#allocation2 + $0x88] ss:$16 sps:$4 sm:$0xff]  }
  0x2d   :  { %1314 = vmatprep.subr.bf16.mxu1 %v2628_v33  ;;  %v41_v4 = vld [vmem:[%s3374_s0] sm:$0xff]  ;;  %v43_v5 = vld [vmem:[%s3374_s0 + $0x10] sm:$0xff]  ;;  %v2709_v33 = vld [vmem:[#allocation2 + $0x6c] ss:$16 sps:$4 sm:$0xff]  }
  0x2e   :  { %v2676_v6 = vld [vmem:[#allocation2 + $0x4e4] ss:$16 sps:$4 sm:$0xff]   ;;  %v3073_v8 = vpack.c.bf16 %v41_v4, %v41_v4  ;;  %v3075_v9 = vpack.c.bf16 %v43_v5, %v43_v5  ;;  %v2674_v10 = vld [vmem:[#allocation2 + $0x4e0] ss:$16 sps:$4 sm:$0xff]   ;;  %v2757_v4 = vld [vmem:[#allocation2 + $0x16c] ss:$16 sps:$4 sm:$0xff]  }
  0x2f   :  { %1274 = vmatpush2.bf16.msra.mxu0 %v2630_v34  ;;  %v2679_v7 = vld [vmem:[#allocation2 + $0x604] ss:$16 sps:$4 sm:$0xff]   ;;  %v2677_v11 = vld [vmem:[#allocation2 + $0x600] ss:$16 sps:$4 sm:$0xff]  }
  0x30   :  { %1315 = vmatpush2.bf16.msra.mxu1 %v2631_v35  ;;  %1275 = vmatprep.subr.bf16.mxu0 %v2632_v36  ;;  %v2682_v12 = vld [vmem:[#allocation2 + $0x4c4] ss:$16 sps:$4 sm:$0xff]   ;;  %v2680_v14 = vld [vmem:[#allocation2 + $0x4c0] ss:$16 sps:$4 sm:$0xff]   ;;  %v46_v35 = vld [vmem:[%s3374_s0 + $0x28] sm:$0xff] }
  0x31   :  { %1316 = vmatprep.subr.bf16.mxu1 %v2634_v37  ;;  %v47_v15 = vld [vmem:[%s3374_s0 + $0x30] sm:$0xff]  ;;  %v3091_v36 = vpack.c.bf16 %v46_v35, %v46_v35  ;;  %v2707_v37 = vld [vmem:[#allocation2 + $0x68] ss:$16 sps:$4 sm:$0xff]   ;;  %v2796_v35 = vld [vmem:[#allocation2 + $0x26c] ss:$16 sps:$4 sm:$0xff]  }
  0x32   :  { %v2688_v17 = vld [vmem:[#allocation2 + $0x4a4] ss:$16 sps:$4 sm:$0xff]   ;;  %v3083_v19 = vpack.c.bf16 %v47_v15, %v47_v15  ;;  %v2686_v20 = vld [vmem:[#allocation2 + $0x4a0] ss:$16 sps:$4 sm:$0xff]  }
  0x33   :  { %1276 = vmatpush2.bf16.msra.mxu0 %v2636_v38  ;;  %v2694_v22 = vld [vmem:[#allocation2 + $0x484] ss:$16 sps:$4 sm:$0xff]   ;;  %v2692_v24 = vld [vmem:[#allocation2 + $0x480] ss:$16 sps:$4 sm:$0xff]  }
  0x34   :  { %1317 = vmatpush2.bf16.msra.mxu1 %v2637_v39  ;;  %1277 = vmatprep.subr.bf16.mxu0 %v2638_v40  ;;  %v2700_v26 = vld [vmem:[#allocation2 + $0x464] ss:$16 sps:$4 sm:$0xff]   ;;  %v2698_v28 = vld [vmem:[#allocation2 + $0x460] ss:$16 sps:$4 sm:$0xff]   ;;  %v2715_v39 = vld [vmem:[#allocation2 + $0x4c] ss:$16 sps:$4 sm:$0xff]  }
  0x35   :  { %1318 = vmatprep.subr.bf16.mxu1 %v2640_v41  ;;  %v2706_v30 = vld [vmem:[#allocation2 + $0x444] ss:$16 sps:$4 sm:$0xff]   ;;  %v2704_v32 = vld [vmem:[#allocation2 + $0x440] ss:$16 sps:$4 sm:$0xff]   ;;  %v2713_v41 = vld [vmem:[#allocation2 + $0x48] ss:$16 sps:$4 sm:$0xff]  }
  0x36   :  { %v2712_v34 = vld [vmem:[#allocation2 + $0x424] ss:$16 sps:$4 sm:$0xff]   ;;  %v2710_v38 = vld [vmem:[#allocation2 + $0x420] ss:$16 sps:$4 sm:$0xff]  }
  0x37   :  { %1278 = vmatpush2.bf16.msra.mxu0 %v2642_v42  ;;  %v2718_v40 = vld [vmem:[#allocation2 + $0x404] ss:$16 sps:$4 sm:$0xff]   ;;  %v2716_v42 = vld [vmem:[#allocation2 + $0x400] ss:$16 sps:$4 sm:$0xff]  }
  0x38   :  { %1319 = vmatpush2.bf16.msra.mxu1 %v2643_v43  ;;  %1279 = vmatprep.subr.bf16.mxu0 %v2644_v44  ;;  %v2721_v43 = vld [vmem:[#allocation2 + $0x2c] ss:$16 sps:$4 sm:$0xff]   ;;  %v2724_v44 = vld [vmem:[#allocation2 + $0x5e4] ss:$16 sps:$4 sm:$0xff]   ;;  %v2722_v46 = vld [vmem:[#allocation2 + $0x5e0] ss:$16 sps:$4 sm:$0xff]  }
  0x39   :  { %1320 = vmatprep.subr.bf16.mxu1 %v2646_v45  ;;  %v2719_v45 = vld [vmem:[#allocation2 + $0x28] ss:$16 sps:$4 sm:$0xff]   ;;  %v2728_v50 = vld [vmem:[#allocation2 + $0x5c0] ss:$16 sps:$4 sm:$0xff]   ;;  %v2760_v5 = vld [vmem:[#allocation2 + $0x524] ss:$16 sps:$4 sm:$0xff]  }
  0x3a   :  { %v45_v15 = vld [vmem:[%s3374_s0 + $0x20] sm:$0xff] }
  0x3b   :  { %1280 = vmatpush2.bf16.msra.mxu0 %v2648_v47  ;;  %v2727_v47 = vld [vmem:[#allocation2 + $0xc] ss:$16 sps:$4 sm:$0xff]  }
  0x3c   :  { %1321 = vmatpush2.bf16.msra.mxu1 %v2649_v48  ;;  %1281 = vmatprep.subr.bf16.mxu0 %v2650_v51  ;;  %v2730_v48 = vld [vmem:[#allocation2 + $0x5c4] ss:$16 sps:$4 sm:$0xff]   ;;  %v2733_v51 = vld [vmem:[#allocation2 + $0x1ec] ss:$16 sps:$4 sm:$0xff]  }
  0x3d   :  { %1322 = vmatprep.subr.bf16.mxu1 %v2652_v53  ;;  %v2736_v53 = vld [vmem:[#allocation2 + $0x5a4] ss:$16 sps:$4 sm:$0xff]  }
  0x3f   :  { %1282 = vmatpush2.bf16.msra.mxu0 %v2654_v54  ;;  %v2731_v54 = vld [vmem:[#allocation2 + $0x1e8] ss:$16 sps:$4 sm:$0xff]  }
  0x40   :  { %1323 = vmatpush2.bf16.msra.mxu1 %v2655_v55  ;;  %1283 = vmatprep.subr.bf16.mxu0 %v2656_v56  ;;  %v2734_v55 = vld [vmem:[#allocation2 + $0x5a0] ss:$16 sps:$4 sm:$0xff]   ;;  %v2739_v56 = vld [vmem:[#allocation2 + $0x1cc] ss:$16 sps:$4 sm:$0xff]  }
  0x41   :  { %1324 = vmatprep.subr.bf16.mxu1 %v2658_v57  ;;  %v2742_v57 = vld [vmem:[#allocation2 + $0x584] ss:$16 sps:$4 sm:$0xff]  }
  0x43   :  { %1284 = vmatpush2.bf16.msra.mxu0 %v2660_v58  ;;  %v2737_v58 = vld [vmem:[#allocation2 + $0x1c8] ss:$16 sps:$4 sm:$0xff]  }
  0x44   :  { %1325 = vmatpush2.bf16.msra.mxu1 %v2661_v59  ;;  %1285 = vmatprep.subr.bf16.mxu0 %v2662_v60  ;;  %v2740_v59 = vld [vmem:[#allocation2 + $0x580] ss:$16 sps:$4 sm:$0xff]   ;;  %v2745_v60 = vld [vmem:[#allocation2 + $0x1ac] ss:$16 sps:$4 sm:$0xff]  }
  0x45   :  { %1326 = vmatprep.subr.bf16.mxu1 %v2664_v61  ;;  %v2748_v61 = vld [vmem:[#allocation2 + $0x564] ss:$16 sps:$4 sm:$0xff]  }
  0x47   :  { %1286 = vmatpush2.bf16.msra.mxu0 %v2666_v62  ;;  %v2743_v62 = vld [vmem:[#allocation2 + $0x1a8] ss:$16 sps:$4 sm:$0xff]  }
  0x48   :  { %1327 = vmatpush2.bf16.msra.mxu1 %v2667_v63  ;;  %1287 = vmatprep.subr.bf16.mxu0 %v2668_v0  ;;  %v2746_v63 = vld [vmem:[#allocation2 + $0x560] ss:$16 sps:$4 sm:$0xff]   ;;  %v2751_v0 = vld [vmem:[#allocation2 + $0x18c] ss:$16 sps:$4 sm:$0xff]  }
  0x49   :  { %1328 = vmatprep.subr.bf16.mxu1 %v2670_v1  ;;  %v2754_v1 = vld [vmem:[#allocation2 + $0x544] ss:$16 sps:$4 sm:$0xff]  }
  0x4b   :  { %1288 = vmatpush2.bf16.msra.mxu0 %v2672_v2  ;;  %v2749_v2 = vld [vmem:[#allocation2 + $0x188] ss:$16 sps:$4 sm:$0xff]  }
  0x4c   :  { %1329 = vmatpush2.bf16.msra.mxu1 %v2673_v3  ;;  %1339 = vmatprep.subr.bf16.mxu0 %v2676_v6  ;;  %v2752_v3 = vld [vmem:[#allocation2 + $0x540] ss:$16 sps:$4 sm:$0xff]   ;;  %v2755_v6 = vld [vmem:[#allocation2 + $0x168] ss:$16 sps:$4 sm:$0xff]  }
  0x4d   :  { %1394 = vmatprep.subr.bf16.mxu1 %v2679_v7  ;;  %v2758_v7 = vld [vmem:[#allocation2 + $0x520] ss:$16 sps:$4 sm:$0xff]  }
  0x4e   :  { %1290 = vmatmul.mubr.bf16.vlgmr.msra.gmra.mxu0 %v3073_v8 }
  0x4f   :  { %1331 = vmatmul.mubr.bf16.vlgmr.msra.gmra.mxu1 %v3075_v9  ;;  %1340 = vmatpush1.bf16.msra.mxu0 %v2674_v10  ;;  %v2763_v10 = vld [vmem:[#allocation2 + $0x14c] ss:$16 sps:$4 sm:$0xff]  }
  0x50   :  { %1395 = vmatpush1.bf16.msra.mxu1 %v2677_v11  ;;  %1341 = vmatprep.subr.bf16.mxu0 %v2682_v12  ;;  %v2766_v11 = vld [vmem:[#allocation2 + $0x504] ss:$16 sps:$4 sm:$0xff]   ;;  %v2761_v12 = vld [vmem:[#allocation2 + $0x148] ss:$16 sps:$4 sm:$0xff]  }
  0x51   :  { %1412 = vmatprep.mubr.bf16.mxu1 %v3011_v16  ;;  %1421 = vmatprep.subr.bf16.mxu1 %v2685_v13  ;;  %v2764_v13 = vld [vmem:[#allocation2 + $0x500] ss:$16 sps:$4 sm:$0xff]  }
  0x52   :  { %1371 = vmatprep.mubr.bf16.mxu0 %v3091_v36 }
  0x53   :  { %1342 = vmatpush1.bf16.msra.mxu0 %v2680_v14  ;;  %v2769_v14 = vld [vmem:[#allocation2 + $0x12c] ss:$16 sps:$4 sm:$0xff]  }
  0x54   :  { %1343 = vmatprep.subr.bf16.mxu0 %v2688_v17  ;;  %v2772_v17 = vld [vmem:[#allocation2 + $0x2ec] ss:$16 sps:$4 sm:$0xff]  }
  0x57   :  { %2469 = vmatmul.mubr.msk.bf16.vlgmr.msra.gmra.mxu1 %vm1253_vm0, %v3083_v19  ;;  %1344 = vmatpush1.bf16.msra.mxu0 %v2686_v20  ;;  %v3097_v20 = vpack.c.bf16 %v45_v15, %v45_v15  ;;  %v2859_v15 = vld [vmem:[#allocation2 + $0x54c] ss:$16 sps:$4 sm:$0xff]  }
  0x58   :  { %1422 = vmatpush1.bf16.msra.mxu1 %v2683_v18  ;;  %1345 = vmatprep.subr.bf16.mxu0 %v2694_v22  ;;  %v2767_v18 = vld [vmem:[#allocation2 + $0x128] ss:$16 sps:$4 sm:$0xff]   ;;  %v2775_v22 = vld [vmem:[#allocation2 + $0x10c] ss:$16 sps:$4 sm:$0xff]  }
  0x59   :  { %1423 = vmatprep.subr.bf16.mxu1 %v2691_v21  ;;  %1453 = vmatprep.mubr.bf16.mxu1 %v3058_v49  ;;  %v2725_v49 = vld [vmem:[#allocation2 + $0x8] ss:$16 sps:$4 sm:$0xff]  }
  0x5a   :  { %v2770_v21 = vld [vmem:[#allocation2 + $0x2e8] ss:$16 sps:$4 sm:$0xff]  }
  0x5b   :  { %1346 = vmatpush1.bf16.msra.mxu0 %v2692_v24  ;;  %v2773_v24 = vld [vmem:[#allocation2 + $0x108] ss:$16 sps:$4 sm:$0xff]  }
  0x5c   :  { %1424 = vmatpush1.bf16.msra.mxu1 %v2689_v23  ;;  %1347 = vmatprep.subr.bf16.mxu0 %v2700_v26  ;;  %v2778_v23 = vld [vmem:[#allocation2 + $0x2cc] ss:$16 sps:$4 sm:$0xff]  }
  0x5d   :  { %1425 = vmatprep.subr.bf16.mxu1 %v2697_v25  ;;  %v2776_v25 = vld [vmem:[#allocation2 + $0x2c8] ss:$16 sps:$4 sm:$0xff]   ;;  %v2781_v26 = vld [vmem:[#allocation2 + $0x4ec] ss:$16 sps:$4 sm:$0xff]  }
  0x5f   :  { %1348 = vmatpush1.bf16.msra.mxu0 %v2698_v28  ;;  %v2779_v28 = vld [vmem:[#allocation2 + $0x4e8] ss:$16 sps:$4 sm:$0xff]  }
  0x60   :  { %1426 = vmatpush1.bf16.msra.mxu1 %v2695_v27  ;;  %1349 = vmatprep.subr.bf16.mxu0 %v2706_v30  ;;  %v2784_v27 = vld [vmem:[#allocation2 + $0x2ac] ss:$16 sps:$4 sm:$0xff]  }
  0x61   :  { %1427 = vmatprep.subr.bf16.mxu1 %v2703_v29  ;;  %v2782_v29 = vld [vmem:[#allocation2 + $0x2a8] ss:$16 sps:$4 sm:$0xff]   ;;  %v2787_v30 = vld [vmem:[#allocation2 + $0x4cc] ss:$16 sps:$4 sm:$0xff]  }
  0x63   :  { %1350 = vmatpush1.bf16.msra.mxu0 %v2704_v32  ;;  %v2785_v32 = vld [vmem:[#allocation2 + $0x4c8] ss:$16 sps:$4 sm:$0xff]  }
  0x64   :  { %1428 = vmatpush1.bf16.msra.mxu1 %v2701_v31  ;;  %1351 = vmatprep.subr.bf16.mxu0 %v2712_v34  ;;  %v2790_v31 = vld [vmem:[#allocation2 + $0x28c] ss:$16 sps:$4 sm:$0xff]  }
  0x65   :  { %1429 = vmatprep.subr.bf16.mxu1 %v2709_v33  ;;  %v2788_v33 = vld [vmem:[#allocation2 + $0x288] ss:$16 sps:$4 sm:$0xff]   ;;  %v2793_v34 = vld [vmem:[#allocation2 + $0x4ac] ss:$16 sps:$4 sm:$0xff]  }
  0x67   :  { %1352 = vmatpush1.bf16.msra.mxu0 %v2710_v38  ;;  %v2799_v38 = vld [vmem:[#allocation2 + $0x48c] ss:$16 sps:$4 sm:$0xff]  }
  0x68   :  { %1430 = vmatpush1.bf16.msra.mxu1 %v2707_v37  ;;  %1353 = vmatprep.subr.bf16.mxu0 %v2718_v40  ;;  %v2791_v37 = vld [vmem:[#allocation2 + $0x4a8] ss:$16 sps:$4 sm:$0xff]  }
  0x69   :  { %1431 = vmatprep.subr.bf16.mxu1 %v2715_v39  ;;  %v2802_v39 = vld [vmem:[#allocation2 + $0x24c] ss:$16 sps:$4 sm:$0xff]   ;;  %v2797_v40 = vld [vmem:[#allocation2 + $0x488] ss:$16 sps:$4 sm:$0xff]  }
  0x6b   :  { %1354 = vmatpush1.bf16.msra.mxu0 %v2716_v42  ;;  %v2808_v42 = vld [vmem:[#allocation2 + $0x22c] ss:$16 sps:$4 sm:$0xff]  }
  0x6c   :  { %1432 = vmatpush1.bf16.msra.mxu1 %v2713_v41  ;;  %1355 = vmatprep.subr.bf16.mxu0 %v2724_v44  ;;  %v2805_v41 = vld [vmem:[#allocation2 + $0x46c] ss:$16 sps:$4 sm:$0xff]  }
  0x6d   :  { %1433 = vmatprep.subr.bf16.mxu1 %v2721_v43  ;;  %v2803_v43 = vld [vmem:[#allocation2 + $0x468] ss:$16 sps:$4 sm:$0xff]   ;;  %v2811_v44 = vld [vmem:[#allocation2 + $0x44c] ss:$16 sps:$4 sm:$0xff]  }
  0x6f   :  { %1356 = vmatpush2.bf16.msra.mxu0 %v2722_v46  ;;  %v2809_v46 = vld [vmem:[#allocation2 + $0x448] ss:$16 sps:$4 sm:$0xff]  }
  0x70   :  { %1434 = vmatpush1.bf16.msra.mxu1 %v2719_v45  ;;  %1357 = vmatprep.subr.bf16.mxu0 %v2730_v48  ;;  %v2814_v45 = vld [vmem:[#allocation2 + $0x20c] ss:$16 sps:$4 sm:$0xff]  }
  0x71   :  { %1435 = vmatprep.subr.bf16.mxu1 %v2727_v47  ;;  %v2812_v47 = vld [vmem:[#allocation2 + $0x208] ss:$16 sps:$4 sm:$0xff]   ;;  %v2817_v48 = vld [vmem:[#allocation2 + $0x42c] ss:$16 sps:$4 sm:$0xff]  }
  0x73   :  { %1358 = vmatpush2.bf16.msra.mxu0 %v2728_v50  ;;  %v2815_v50 = vld [vmem:[#allocation2 + $0x428] ss:$16 sps:$4 sm:$0xff]  }
  0x74   :  { %1436 = vmatpush1.bf16.msra.mxu1 %v2725_v49  ;;  %1359 = vmatprep.subr.bf16.mxu0 %v2736_v53  ;;  %v2820_v49 = vld [vmem:[#allocation2 + $0x3ec] ss:$16 sps:$4 sm:$0xff]  }
  0x75   :  { %1437 = vmatprep.subr.bf16.mxu1 %v2733_v51  ;;  %v2818_v51 = vld [vmem:[#allocation2 + $0x3e8] ss:$16 sps:$4 sm:$0xff]   ;;  %v2823_v53 = vld [vmem:[#allocation2 + $0x40c] ss:$16 sps:$4 sm:$0xff]  }
  0x77   :  { %1360 = vmatpush2.bf16.msra.mxu0 %v2734_v55  ;;  %v2821_v55 = vld [vmem:[#allocation2 + $0x408] ss:$16 sps:$4 sm:$0xff]  }
  0x78   :  { %1438 = vmatpush2.bf16.msra.mxu1 %v2731_v54  ;;  %1361 = vmatprep.subr.bf16.mxu0 %v2742_v57  ;;  %v2826_v54 = vld [vmem:[#allocation2 + $0x3cc] ss:$16 sps:$4 sm:$0xff]  }
  0x79   :  { %1439 = vmatprep.subr.bf16.mxu1 %v2739_v56  ;;  %v2824_v56 = vld [vmem:[#allocation2 + $0x3c8] ss:$16 sps:$4 sm:$0xff]   ;;  %v2829_v57 = vld [vmem:[#allocation2 + $0x5ec] ss:$16 sps:$4 sm:$0xff]  }
  0x7b   :  { %1362 = vmatpush2.bf16.msra.mxu0 %v2740_v59  ;;  %v2827_v59 = vld [vmem:[#allocation2 + $0x5e8] ss:$16 sps:$4 sm:$0xff]  }
  0x7c   :  { %1440 = vmatpush2.bf16.msra.mxu1 %v2737_v58  ;;  %1363 = vmatprep.subr.bf16.mxu0 %v2748_v61  ;;  %v2832_v58 = vld [vmem:[#allocation2 + $0x3ac] ss:$16 sps:$4 sm:$0xff]  }
  0x7d   :  { %1441 = vmatprep.subr.bf16.mxu1 %v2745_v60  ;;  %v2830_v60 = vld [vmem:[#allocation2 + $0x3a8] ss:$16 sps:$4 sm:$0xff]   ;;  %v2835_v61 = vld [vmem:[#allocation2 + $0x5cc] ss:$16 sps:$4 sm:$0xff]  }
  0x7f   :  { %1364 = vmatpush2.bf16.msra.mxu0 %v2746_v63  ;;  %v2833_v63 = vld [vmem:[#allocation2 + $0x5c8] ss:$16 sps:$4 sm:$0xff]  }
  0x80   :  { %1442 = vmatpush2.bf16.msra.mxu1 %v2743_v62  ;;  %1365 = vmatprep.subr.bf16.mxu0 %v2754_v1  ;;  %v2838_v62 = vld [vmem:[#allocation2 + $0x38c] ss:$16 sps:$4 sm:$0xff]  }
  0x81   :  { %1443 = vmatprep.subr.bf16.mxu1 %v2751_v0  ;;  %v2836_v0 = vld [vmem:[#allocation2 + $0x388] ss:$16 sps:$4 sm:$0xff]   ;;  %v2841_v1 = vld [vmem:[#allocation2 + $0x5ac] ss:$16 sps:$4 sm:$0xff]  }
  0x83   :  { %1366 = vmatpush2.bf16.msra.mxu0 %v2752_v3  ;;  %v2839_v3 = vld [vmem:[#allocation2 + $0x5a8] ss:$16 sps:$4 sm:$0xff]  }
  0x84   :  { %1444 = vmatpush2.bf16.msra.mxu1 %v2749_v2  ;;  %1367 = vmatprep.subr.bf16.mxu0 %v2760_v5  ;;  %v2844_v2 = vld [vmem:[#allocation2 + $0x36c] ss:$16 sps:$4 sm:$0xff]  }
  0x85   :  { %1445 = vmatprep.subr.bf16.mxu1 %v2757_v4  ;;  %v2842_v4 = vld [vmem:[#allocation2 + $0x368] ss:$16 sps:$4 sm:$0xff]   ;;  %v2847_v5 = vld [vmem:[#allocation2 + $0x58c] ss:$16 sps:$4 sm:$0xff]  }
  0x87   :  { %1368 = vmatpush2.bf16.msra.mxu0 %v2758_v7  ;;  %v2845_v7 = vld [vmem:[#allocation2 + $0x588] ss:$16 sps:$4 sm:$0xff]  }
  0x88   :  { %1446 = vmatpush2.bf16.msra.mxu1 %v2755_v6  ;;  %1369 = vmatprep.subr.bf16.mxu0 %v2766_v11  ;;  %v2850_v6 = vld [vmem:[#allocation2 + $0x34c] ss:$16 sps:$4 sm:$0xff]  }
  0x89   :  { %1447 = vmatprep.subr.bf16.mxu1 %v2763_v10  ;;  %v2848_v10 = vld [vmem:[#allocation2 + $0x348] ss:$16 sps:$4 sm:$0xff]   ;;  %v2853_v11 = vld [vmem:[#allocation2 + $0x56c] ss:$16 sps:$4 sm:$0xff]  }
  0x8b   :  { %1370 = vmatpush2.bf16.msra.mxu0 %v2764_v13  ;;  %v2851_v13 = vld [vmem:[#allocation2 + $0x568] ss:$16 sps:$4 sm:$0xff]  }
  0x8c   :  { %1448 = vmatpush2.bf16.msra.mxu1 %v2761_v12  ;;  %1462 = vmatprep.subr.bf16.mxu0 %v2772_v17  ;;  %v2856_v12 = vld [vmem:[#allocation2 + $0x32c] ss:$16 sps:$4 sm:$0xff]  }
  0x8d   :  { %1449 = vmatprep.subr.bf16.mxu1 %v2769_v14  ;;  %v2854_v14 = vld [vmem:[#allocation2 + $0x328] ss:$16 sps:$4 sm:$0xff]   ;;  %v2862_v17 = vld [vmem:[#allocation2 + $0x30c] ss:$16 sps:$4 sm:$0xff]  }
  0x8e   :  { %1372 = vmatmul.mubr.bf16.vlgmr.msra.gmra.mxu0 %v3097_v20 }
  0x8f   :  { %1463 = vmatpush1.bf16.msra.mxu0 %v2770_v21  ;;  %1494 = vmatprep.mubr.bf16.mxu0 %v3063_v52  ;;  %v2794_v52 = vld [vmem:[#allocation2 + $0x268] ss:$16 sps:$4 sm:$0xff]  }
  0x90   :  { %1450 = vmatpush2.bf16.msra.mxu1 %v2767_v18  ;;  %1464 = vmatprep.subr.bf16.mxu0 %v2778_v23  ;;  %v2857_v18 = vld [vmem:[#allocation2 + $0x548] ss:$16 sps:$4 sm:$0xff]   ;;  %v2874_v23 = vld [vmem:[%s3377_s3 + $0x74] ss:$8 sps:$4 sm:$0xff]  }
  0x91   :  { %1451 = vmatprep.subr.bf16.mxu1 %v2775_v22  ;;  %v2860_v21 = vld [vmem:[#allocation2 + $0x308] ss:$16 sps:$4 sm:$0xff]   ;;  %v2865_v22 = vld [vmem:[#allocation2 + $0x52c] ss:$16 sps:$4 sm:$0xff]  }
  0x93   :  { %1465 = vmatpush1.bf16.msra.mxu0 %v2776_v25  ;;  %v2872_v25 = vld [vmem:[%s3377_s3 + $0x70] ss:$8 sps:$4 sm:$0xff]  }
  0x94   :  { %1452 = vmatpush2.bf16.msra.mxu1 %v2773_v24  ;;  %1466 = vmatprep.subr.bf16.mxu0 %v2784_v27  ;;  %v2863_v24 = vld [vmem:[#allocation2 + $0x528] ss:$16 sps:$4 sm:$0xff]   ;;  %v2877_v27 = vld [vmem:[%s3377_s3 + $0x64] ss:$8 sps:$4 sm:$0xff]  }
  0x95   :  { %1503 = vmatprep.subr.bf16.mxu1 %v2781_v26  ;;  %v2868_v26 = vld [vmem:[#allocation2 + $0x50c] ss:$16 sps:$4 sm:$0xff]  }
  0x97   :  { %1454 = vmatmul.mubr.bf16.vlgmr.msra.gmra.mxu1 %v3073_v8  ;;  %1467 = vmatpush1.bf16.msra.mxu0 %v2782_v29  ;;  %v2800_v8 = vld [vmem:[#allocation2 + $0x248] ss:$16 sps:$4 sm:$0xff]  }
  0x98   :  { %1504 = vmatpush1.bf16.msra.mxu1 %v2779_v28  ;;  %1468 = vmatprep.subr.bf16.mxu0 %v2790_v31  ;;  %v2866_v28 = vld [vmem:[#allocation2 + $0x508] ss:$16 sps:$4 sm:$0xff]   ;;  %v2880_v31 = vld [vmem:[%s3377_s3 + $0x54] ss:$8 sps:$4 sm:$0xff]  }
  0x99   :  { %1505 = vmatprep.subr.bf16.mxu1 %v2787_v30  ;;  %1535 = vmatprep.mubr.bf16.mxu1 %v3091_v36  ;;  %v2806_v36 = vld [vmem:[#allocation2 + $0x228] ss:$16 sps:$4 sm:$0xff]   ;;  %v2871_v30 = vld [vmem:[#allocation2 + $0x60c] ss:$16 sps:$4 sm:$0xff]  }
  0x9a   :  { %v2875_v29 = vld [vmem:[%s3377_s3 + $0x60] ss:$8 sps:$4 sm:$0xff]  }
  0x9b   :  { %1469 = vmatpush1.bf16.msra.mxu0 %v2788_v33  ;;  %v2883_v33 = vld [vmem:[%s3377_s3 + $0x44] ss:$8 sps:$4 sm:$0xff]  }
  0x9c   :  { %1506 = vmatpush1.bf16.msra.mxu1 %v2785_v32  ;;  %1470 = vmatprep.subr.bf16.mxu0 %v2796_v35  ;;  %v2869_v32 = vld [vmem:[#allocation2 + $0x608] ss:$16 sps:$4 sm:$0xff]   ;;  %v2886_v35 = vld [vmem:[%s3377_s3 + $0x34] ss:$8 sps:$4 sm:$0xff]  }
  0x9d   :  { %1507 = vmatprep.subr.bf16.mxu1 %v2793_v34  ;;  %v2881_v34 = vld [vmem:[%s3377_s3 + $0x40] ss:$8 sps:$4 sm:$0xff]  }
  0x9f   :  { %1471 = vmatpush1.bf16.msra.mxu0 %v2794_v52  ;;  %v2889_v52 = vld [vmem:[%s3377_s3 + $0x24] ss:$8 sps:$4 sm:$0xff]  }
  0xa0   :  { %1508 = vmatpush1.bf16.msra.mxu1 %v2791_v37  ;;  %1472 = vmatprep.subr.bf16.mxu0 %v2802_v39  ;;  %v2884_v37 = vld [vmem:[%s3377_s3 + $0x30] ss:$8 sps:$4 sm:$0xff]   ;;  %v2923_v39 = vld [vmem:[%s3377_s3 + $0x160] ss:$8 sps:$4 sm:$0xff]  }
  0xa1   :  { %1509 = vmatprep.subr.bf16.mxu1 %v2799_v38  ;;  %v2925_v38 = vld [vmem:[%s3377_s3 + $0x164] ss:$8 sps:$4 sm:$0xff]  }
  0xa3   :  { %1473 = vmatpush1.bf16.msra.mxu0 %v2800_v8  ;;  %v2928_v8 = vld [vmem:[%s3377_s3 + $0x154] ss:$8 sps:$4 sm:$0xff]  }
  0xa4   :  { %1510 = vmatpush1.bf16.msra.mxu1 %v2797_v40  ;;  %1474 = vmatprep.subr.bf16.mxu0 %v2808_v42  ;;  %v2887_v40 = vld [vmem:[%s3377_s3 + $0x20] ss:$8 sps:$4 sm:$0xff]   ;;  %v2890_v42 = vld [vmem:[%s3377_s3 + $0x10] ss:$8 sps:$4 sm:$0xff]  }
  0xa5   :  { %1511 = vmatprep.subr.bf16.mxu1 %v2805_v41  ;;  %v2926_v41 = vld [vmem:[%s3377_s3 + $0x150] ss:$8 sps:$4 sm:$0xff]  }
  0xa7   :  { %1475 = vmatpush1.bf16.msra.mxu0 %v2806_v36  ;;  %v2895_v36 = vld [vmem:[%s3377_s3 + $0x4] ss:$8 sps:$4 sm:$0xff]  }
  0xa8   :  { %1512 = vmatpush1.bf16.msra.mxu1 %v2803_v43  ;;  %1476 = vmatprep.subr.bf16.mxu0 %v2814_v45  ;;  %v2931_v43 = vld [vmem:[%s3377_s3 + $0x144] ss:$8 sps:$4 sm:$0xff]   ;;  %v2893_v45 = vld [vmem:[%s3377_s3] ss:$8 sps:$4 sm:$0xff]  }
  0xa9   :  { %1513 = vmatprep.subr.bf16.mxu1 %v2811_v44  ;;  %v2929_v44 = vld [vmem:[%s3377_s3 + $0x140] ss:$8 sps:$4 sm:$0xff]  }
  0xab   :  { %1477 = vmatpush1.bf16.msra.mxu0 %v2812_v47  ;;  %v2898_v47 = vld [vmem:[%s3377_s3 + $0xf4] ss:$8 sps:$4 sm:$0xff]  }
  0xac   :  { %1514 = vmatpush1.bf16.msra.mxu1 %v2809_v46  ;;  %1478 = vmatprep.subr.bf16.mxu0 %v2820_v49  ;;  %v2934_v46 = vld [vmem:[%s3377_s3 + $0x134] ss:$8 sps:$4 sm:$0xff]   ;;  %v2896_v49 = vld [vmem:[%s3377_s3 + $0xf0] ss:$8 sps:$4 sm:$0xff]  }
  0xad   :  { %1515 = vmatprep.subr.bf16.mxu1 %v2817_v48  ;;  %v2932_v48 = vld [vmem:[%s3377_s3 + $0x130] ss:$8 sps:$4 sm:$0xff]  }
  0xaf   :  { %1479 = vmatpush2.bf16.msra.mxu0 %v2818_v51  ;;  %v2901_v51 = vld [vmem:[%s3377_s3 + $0xe4] ss:$8 sps:$4 sm:$0xff]  }
  0xb0   :  { %1516 = vmatpush1.bf16.msra.mxu1 %v2815_v50  ;;  %1480 = vmatprep.subr.bf16.mxu0 %v2826_v54  ;;  %v2937_v50 = vld [vmem:[%s3377_s3 + $0x124] ss:$8 sps:$4 sm:$0xff]   ;;  %v2899_v54 = vld [vmem:[%s3377_s3 + $0xe0] ss:$8 sps:$4 sm:$0xff]  }
  0xb1   :  { %1517 = vmatprep.subr.bf16.mxu1 %v2823_v53  ;;  %v2935_v53 = vld [vmem:[%s3377_s3 + $0x120] ss:$8 sps:$4 sm:$0xff]  }
  0xb3   :  { %1481 = vmatpush2.bf16.msra.mxu0 %v2824_v56  ;;  %v2904_v56 = vld [vmem:[%s3377_s3 + $0xd4] ss:$8 sps:$4 sm:$0xff]  }
  0xb4   :  { %1518 = vmatpush1.bf16.msra.mxu1 %v2821_v55  ;;  %1482 = vmatprep.subr.bf16.mxu0 %v2832_v58  ;;  %v2940_v55 = vld [vmem:[%s3377_s3 + $0x114] ss:$8 sps:$4 sm:$0xff]   ;;  %v2902_v58 = vld [vmem:[%s3377_s3 + $0xd0] ss:$8 sps:$4 sm:$0xff]  }
  0xb5   :  { %1519 = vmatprep.subr.bf16.mxu1 %v2829_v57  ;;  %v2938_v57 = vld [vmem:[%s3377_s3 + $0x110] ss:$8 sps:$4 sm:$0xff]  }
  0xb7   :  { %1483 = vmatpush2.bf16.msra.mxu0 %v2830_v60  ;;  %v2907_v60 = vld [vmem:[%s3377_s3 + $0xc4] ss:$8 sps:$4 sm:$0xff]  }
  0xb8   :  { %1520 = vmatpush2.bf16.msra.mxu1 %v2827_v59  ;;  %1484 = vmatprep.subr.bf16.mxu0 %v2838_v62  ;;  %v2943_v59 = vld [vmem:[%s3377_s3 + $0x104] ss:$8 sps:$4 sm:$0xff]   ;;  %v2905_v62 = vld [vmem:[%s3377_s3 + $0xc0] ss:$8 sps:$4 sm:$0xff]  }
  0xb9   :  { %1521 = vmatprep.subr.bf16.mxu1 %v2835_v61  ;;  %v2941_v61 = vld [vmem:[%s3377_s3 + $0x100] ss:$8 sps:$4 sm:$0xff]  }
  0xbb   :  { %1485 = vmatpush2.bf16.msra.mxu0 %v2836_v0  ;;  %v2910_v0 = vld [vmem:[%s3377_s3 + $0xb4] ss:$8 sps:$4 sm:$0xff]  }
  0xbc   :  { %1522 = vmatpush2.bf16.msra.mxu1 %v2833_v63  ;;  %1486 = vmatprep.subr.bf16.mxu0 %v2844_v2  ;;  %v2946_v63 = vld [vmem:[%s3377_s3 + $0x1f4] ss:$8 sps:$4 sm:$0xff]   ;;  %v2908_v2 = vld [vmem:[%s3377_s3 + $0xb0] ss:$8 sps:$4 sm:$0xff]  }
  0xbd   :  { %1523 = vmatprep.subr.bf16.mxu1 %v2841_v1  ;;  %v2944_v1 = vld [vmem:[%s3377_s3 + $0x1f0] ss:$8 sps:$4 sm:$0xff]  }
  0xbf   :  { %1487 = vmatpush2.bf16.msra.mxu0 %v2842_v4  ;;  %v2913_v4 = vld [vmem:[%s3377_s3 + $0xa4] ss:$8 sps:$4 sm:$0xff]  }
  0xc0   :  { %1524 = vmatpush2.bf16.msra.mxu1 %v2839_v3  ;;  %1488 = vmatprep.subr.bf16.mxu0 %v2850_v6  ;;  %v2949_v3 = vld [vmem:[%s3377_s3 + $0x1e4] ss:$8 sps:$4 sm:$0xff]   ;;  %v2911_v6 = vld [vmem:[%s3377_s3 + $0xa0] ss:$8 sps:$4 sm:$0xff]  }
  0xc1   :  { %1525 = vmatprep.subr.bf16.mxu1 %v2847_v5  ;;  %v2947_v5 = vld [vmem:[%s3377_s3 + $0x1e0] ss:$8 sps:$4 sm:$0xff]  }
  0xc3   :  { %1489 = vmatpush2.bf16.msra.mxu0 %v2848_v10  ;;  %v2914_v10 = vld [vmem:[%s3377_s3 + $0x90] ss:$8 sps:$4 sm:$0xff]  }
  0xc4   :  { %1526 = vmatpush2.bf16.msra.mxu1 %v2845_v7  ;;  %1490 = vmatprep.subr.bf16.mxu0 %v2856_v12  ;;  %v2916_v7 = vld [vmem:[%s3377_s3 + $0x94] ss:$8 sps:$4 sm:$0xff]   ;;  %v2917_v12 = vld [vmem:[%s3377_s3 + $0x80] ss:$8 sps:$4 sm:$0xff]  }
  0xc5   :  { %1527 = vmatprep.subr.bf16.mxu1 %v2853_v11  ;;  %v2919_v11 = vld [vmem:[%s3377_s3 + $0x84] ss:$8 sps:$4 sm:$0xff]  }
  0xc7   :  { %1491 = vmatpush2.bf16.msra.mxu0 %v2854_v14 }
  0xc8   :  { %1528 = vmatpush2.bf16.msra.mxu1 %v2851_v13  ;;  %1492 = vmatprep.subr.bf16.mxu0 %v2862_v17 }
  0xc9   :  { %1529 = vmatprep.subr.bf16.mxu1 %v2859_v15  ;;  %v2952_v15 = vld [vmem:[%s3377_s3 + $0x1d4] ss:$8 sps:$4 sm:$0xff]  }
  0xcb   :  { %1493 = vmatpush2.bf16.msra.mxu0 %v2860_v21  ;;  %v2950_v21 = vld [vmem:[%s3377_s3 + $0x1d0] ss:$8 sps:$4 sm:$0xff]  }
  0xcc   :  { %1530 = vmatpush2.bf16.msra.mxu1 %v2857_v18  ;;  %1997 = vmatprep.subr.bf16.mxu0 %v2874_v23 }
  0xcd   :  { %1531 = vmatprep.subr.bf16.mxu1 %v2865_v22  ;;  %v2955_v22 = vld [vmem:[%s3377_s3 + $0x1c4] ss:$8 sps:$4 sm:$0xff]  }
  0xce   :  { %1495 = vmatmul.mubr.bf16.vlgmr.msra.gmra.mxu0 %v3075_v9  ;;  %v2878_v9 = vld [vmem:[%s3377_s3 + $0x50] ss:$8 sps:$4 sm:$0xff]  }
  0xcf   :  { %1998 = vmatpush1.bf16.msra.mxu0 %v2872_v25  ;;  %v2953_v25 = vld [vmem:[%s3377_s3 + $0x1c0] ss:$8 sps:$4 sm:$0xff]  }
  0xd0   :  { %1532 = vmatpush2.bf16.msra.mxu1 %v2863_v24  ;;  %1999 = vmatprep.subr.bf16.mxu0 %v2877_v27 }
  0xd1   :  { %1533 = vmatprep.subr.bf16.mxu1 %v2868_v26 }
  0xd3   :  { %2000 = vmatpush1.bf16.msra.mxu0 %v2875_v29  ;;  %v2958_v29 = vld [vmem:[%s3377_s3 + $0x1b4] ss:$8 sps:$4 sm:$0xff]  }
  0xd4   :  { %1534 = vmatpush2.bf16.msra.mxu1 %v2866_v28  ;;  %2001 = vmatprep.subr.bf16.mxu0 %v2880_v31  ;;  %v2956_v31 = vld [vmem:[%s3377_s3 + $0x1b0] ss:$8 sps:$4 sm:$0xff]  }
  0xd5   :  { %1558 = vmatprep.subr.bf16.mxu1 %v2871_v30 }
  0xd7   :  { %1536 = vmatmul.mubr.bf16.vlgmr.msra.gmra.mxu1 %v3097_v20  ;;  %2002 = vmatpush1.bf16.msra.mxu0 %v2878_v9  ;;  %v2920_v20 = vld [vmem:[%s3377_s3 + $0x170] ss:$8 sps:$4 sm:$0xff]   ;;  %v2961_v9 = vld [vmem:[%s3377_s3 + $0x1a4] ss:$8 sps:$4 sm:$0xff]  }
  0xd8   :  { %1559 = vmatpush1.bf16.msra.mxu1 %v2869_v32  ;;  %1576 = vmatprep.mubr.bf16.mxu1 %v3011_v16  ;;  %v2922_v16 = vld [vmem:[%s3377_s3 + $0x174] ss:$8 sps:$4 sm:$0xff]  }
  0xd9   :  { %2003 = vmatprep.subr.bf16.mxu0 %v2883_v33  ;;  %2038 = vmatprep.subr.bf16.mxu1 %v2922_v16  ;;  %v2965_v16 = vld [vmem:[%s3377_s3 + $0x180] ss:$8 sps:$4 sm:$0xff]  }
  0xdb   :  { %2004 = vmatpush1.bf16.msra.mxu0 %v2881_v34  ;;  %v2959_v34 = vld [vmem:[%s3377_s3 + $0x1a0] ss:$8 sps:$4 sm:$0xff]  }
  0xdc   :  { %2005 = vmatprep.subr.bf16.mxu0 %v2886_v35  ;;  %v2964_v35 = vld [vmem:[%s3377_s3 + $0x194] ss:$8 sps:$4 sm:$0xff]  }
  0xdf   :  { %2470 = vmatmul.mubr.msk.bf16.vlgmr.msra.gmra.mxu1 %vm1253_vm0, %v3083_v19  ;;  %2006 = vmatpush1.bf16.msra.mxu0 %v2884_v37  ;;  %v2892_v19 = vld [vmem:[%s3377_s3 + $0x14] ss:$8 sps:$4 sm:$0xff]   ;;  %v2962_v37 = vld [vmem:[%s3377_s3 + $0x190] ss:$8 sps:$4 sm:$0xff]  }
  0xe0   :  { %2039 = vmatpush1.bf16.msra.mxu1 %v2920_v20  ;;  %2007 = vmatprep.subr.bf16.mxu0 %v2889_v52  ;;  %v2967_v20 = vld [vmem:[%s3377_s3 + $0x184] ss:$8 sps:$4 sm:$0xff]   ;;  %v253_v52 = vlaneseq }
  0xe1   :  { %2040 = vmatprep.subr.bf16.mxu1 %v2925_v38 }
  0xe2   :  { %v3300_v38 = vshrl.u32 %v253_v52, 7  ;;  %v2973_v52 = vld [vmem:[%s3379_s5 + $0x28] sm:$0xff]  }
  0xe3   :  { %2008 = vmatpush1.bf16.msra.mxu0 %v2887_v40  ;;  %v251_v40 = vld [vmem:[%s3376_s2] sm:$0xf] }
  0xe4   :  { %2041 = vmatpush1.bf16.msra.mxu1 %v2923_v39  ;;  %2009 = vmatprep.subr.bf16.mxu0 %v2892_v19  ;;  %v255_v39 = vsub.s32 0, %v3300_v38 }
  0xe5   :  { %2042 = vmatprep.subr.bf16.mxu1 %v2928_v8  ;;  %v259_v8 = vsub.s32 1, %v3300_v38 }
  0xe6   :  { %v256_v19 = vrot.slane %v251_v40, %v255_v39 }
  0xe7   :  { %2010 = vmatpush1.bf16.msra.mxu0 %v2890_v42 }
  0xe8   :  { %2043 = vmatpush1.bf16.msra.mxu1 %v2926_v41  ;;  %2011 = vmatprep.subr.bf16.mxu0 %v2895_v36  ;;  %v260_v41 = vrot.slane %v251_v40, %v259_v8 }
  0xe9   :  { %2044 = vmatprep.subr.bf16.mxu1 %v2931_v43 }
  0xeb   :  { %2012 = vmatpush1.bf16.msra.mxu0 %v2893_v45 }
  0xec   :  { %2045 = vmatpush1.bf16.msra.mxu1 %v2929_v44  ;;  %2013 = vmatprep.subr.bf16.mxu0 %v2898_v47 }
  0xed   :  { %2046 = vmatprep.subr.bf16.mxu1 %v2934_v46 }
  0xef   :  { %2014 = vmatpush2.bf16.msra.mxu0 %v2896_v49 }
  0xf0   :  { %2047 = vmatpush1.bf16.msra.mxu1 %v2932_v48  ;;  %2015 = vmatprep.subr.bf16.mxu0 %v2901_v51 }
  0xf1   :  { %2048 = vmatprep.subr.bf16.mxu1 %v2937_v50 }
  0xf3   :  { %2016 = vmatpush2.bf16.msra.mxu0 %v2899_v54 }
  0xf4   :  { %2049 = vmatpush1.bf16.msra.mxu1 %v2935_v53  ;;  %2017 = vmatprep.subr.bf16.mxu0 %v2904_v56 }
  0xf5   :  { %2050 = vmatprep.subr.bf16.mxu1 %v2940_v55 }
  0xf7   :  { %2018 = vmatpush2.bf16.msra.mxu0 %v2902_v58 }
  0xf8   :  { %2051 = vmatpush1.bf16.msra.mxu1 %v2938_v57  ;;  %2019 = vmatprep.subr.bf16.mxu0 %v2907_v60 }
  0xf9   :  { %2052 = vmatprep.subr.bf16.mxu1 %v2943_v59 }
  0xfb   :  { %2020 = vmatpush2.bf16.msra.mxu0 %v2905_v62 }
  0xfc   :  { %2053 = vmatpush1.bf16.msra.mxu1 %v2941_v61  ;;  %2021 = vmatprep.subr.bf16.mxu0 %v2910_v0 }
  0xfd   :  { %2054 = vmatprep.subr.bf16.mxu1 %v2946_v63 }
  0xff   :  { %2022 = vmatpush2.bf16.msra.mxu0 %v2908_v2  ;;  %v263_v2 = vsub.s32 2, %v3300_v38 }
 0x100   :  { %2055 = vmatpush2.bf16.msra.mxu1 %v2944_v1  ;;  %2023 = vmatprep.subr.bf16.mxu0 %v2913_v4  ;;  %v267_v4 = vsub.s32 3, %v3300_v38 }
 0x101   :  { %2056 = vmatprep.subr.bf16.mxu1 %v2949_v3 }
 0x103   :  { %2024 = vmatpush2.bf16.msra.mxu0 %v2911_v6  ;;  %v264_v6 = vrot.slane %v251_v40, %v263_v2 }
 0x104   :  { %2057 = vmatpush2.bf16.msra.mxu1 %v2947_v5  ;;  %2025 = vmatprep.subr.bf16.mxu0 %v2916_v7 }
 0x105   :  { %2058 = vmatprep.subr.bf16.mxu1 %v2952_v15 }
 0x107   :  { %2026 = vmatpush2.bf16.msra.mxu0 %v2914_v10  ;;  %v268_v10 = vrot.slane %v251_v40, %v267_v4  ;;  %v2974_v40 = vld [vmem:[%s3379_s5 + $0x60] sm:$0xff]  }
 0x108   :  { %2027 = vmatprep.subr.bf16.mxu0 %v2919_v11  ;;  %2059 = vmatpush2.bf16.msra.mxu1 %v2950_v21 }
 0x109   :  { %2060 = vmatprep.subr.bf16.mxu1 %v2955_v22 }
 0x10b   :  { %2028 = vmatpush2.bf16.msra.mxu0 %v2917_v12 }
 0x10c   :  { %2061 = vmatpush2.bf16.msra.mxu1 %v2953_v25 }
 0x10d   :  { %2062 = vmatprep.subr.bf16.mxu1 %v2958_v29  ;;  %v2969_v29 = vld [vmem:[%s3379_s5 + $0x38] sm:$0xff]  }
 0x10e   :  { %v1291_v13 = vpop.f32.mrf.mxu0 }
 0x10f   :  { %v1332_v14 = vpop.f32.mrf.mxu1  ;;  %v1292_v42 = vadd.f32 %v1291_v13, %v256_v19  ;;  %v2975_v19 = vld [vmem:[%s3379_s5 + $0x20] sm:$0xff]  }
 0x110   :  { %v1293_v17 = vpop.f32.mrf.mxu0  ;;  %2063 = vmatpush2.bf16.msra.mxu1 %v2956_v31 }
 0x111   :  { %v1334_v18 = vpop.f32.mrf.mxu1  ;;  %2064 = vmatprep.subr.bf16.mxu1 %v2961_v9  ;;  %v1294_v43 = vadd.f32 %v1293_v17, %v260_v41  ;;  %v1333_v36 = vadd.f32 %v1332_v14, %v1292_v42  ;;  %v2976_v41 = vld [vmem:[%s3379_s5 + $0x58] sm:$0xff]  }
 0x112   :  { %v1295_v24 = vpop.f32.mrf.mxu0  ;;  %v2977_v42 = vld [vmem:[%s3379_s5 + $0x18] sm:$0xff]  }
 0x113   :  { %v1336_v23 = vpop.f32.mrf.mxu1  ;;  %v1335_v45 = vadd.f32 %v1334_v18, %v1294_v43  ;;  %v2978_v43 = vld [vmem:[%s3379_s5 + $0x50] sm:$0xff]  }
 0x114   :  { %v1296_v27 = vpop.f32.mrf.mxu0  ;;  %2065 = vmatpush2.bf16.msra.mxu1 %v2959_v34  ;;  %v2971_v34 = vld [vmem:[%s3379_s5 + $0x30] sm:$0xff]  }
 0x115   :  { %v1337_v26 = vpop.f32.mrf.mxu1  ;;  %2066 = vmatprep.subr.bf16.mxu1 %v2964_v35 }
 0x117   :  { %v1414_v28 = vpop.f32.mrf.mxu1 }
 0x118   :  { %2067 = vmatpush2.bf16.msra.mxu1 %v2962_v37  ;;  %v2972_v37 = vld [vmem:[%s3379_s5 + $0x68] sm:$0xff]  }
 0x119   :  { %v1416_v30 = vpop.f32.mrf.mxu1  ;;  %2068 = vmatprep.subr.bf16.mxu1 %v2967_v20 }
 0x11b   :  { %v1418_v32 = vpop.f32.mrf.mxu1 }
 0x11c   :  { %2069 = vmatpush2.bf16.msra.mxu1 %v2965_v16 }
 0x11d   :  { %v1419_v33 = vpop.f32.mrf.mxu1 }
 0x14e   :  { %v1373_v44 = vpop.f32.mrf.mxu0 }
 0x14f   :  { %v1374_v46 = vadd.f32 %v1373_v44, %v1333_v36  ;;  %v2979_v36 = vld [vmem:[%s3379_s5 + $0x10] sm:$0xff]   ;;  %v2980_v44 = vld [vmem:[%s3379_s5 + $0x48] sm:$0xff]  }
 0x150   :  { %v1375_v47 = vpop.f32.mrf.mxu0 }
 0x151   :  { %v1415_v48 = vadd.f32 %v1414_v28, %v1374_v46  ;;  %v1376_v49 = vadd.f32 %v1375_v47, %v1335_v45  ;;  %v2968_v28 = vld [vmem:[%s3379_s5 + $0x78] sm:$0xff]   ;;  %v2981_v45 = vld [vmem:[%s3379_s5 + $0x8] sm:$0xff]   ;;  %v2982_v46 = vld [vmem:[%s3379_s5 + $0x40] sm:$0xff]  }
 0x152   :  { %v1377_v50 = vpop.f32.mrf.mxu0  ;;  %2552 = vmatprep.subr.bf16.mxu0 %v2968_v28  ;;  %v2983_v47 = vld [vmem:[%s3379_s5] sm:$0xff]  }
 0x153   :  { %vm1585_vm1 = vcmp.gt.f32.partialorder %v1415_v48, 0.0  ;;  %v1589_v51 = vmul.f32 0.01, %v1415_v48  ;;  %v1417_v53 = vadd.f32 %v1416_v30, %v1376_v49  ;;  %v2970_v30 = vld [vmem:[%s3379_s5 + $0x70] sm:$0xff]  }
 0x154   :  { %v1378_v54 = vpop.f32.mrf.mxu0 }
 0x155   :  { %v1590_v55 = vmul.f32 0.01, %v1417_v53  ;;  %vm1586_vm2 = vcmp.gt.f32.partialorder %v1417_v53, 0.0  ;;  %v1593_v56 = vsel %vm1585_vm1, %v1415_v48, %v1589_v51 }
 0x156   :  { %v1597_v61 = vpack.c.bf16 %v1593_v56, %v1593_v56 }
 0x157   :  { %v1455_v57 = vpop.f32.mrf.mxu1  ;;  %v1594_v58 = vsel %vm1586_vm2, %v1417_v53, %v1590_v55  ;;  %v1665_v53 = vld [vmem:[%s3378_s4] sm:$0x3] }
 0x158   :  { %v1598_v60 = vpack.c.bf16 %v1594_v58, %v1594_v58  ;;  %v1456_v12 = vadd.f32 %v1455_v57, %v264_v6  ;;  %v1670_v54 = vrot.slane %v1665_v53, %v255_v39  ;;  %v1674_v55 = vrot.slane %v1665_v53, %v259_v8  ;;  %v2535_v39 = vld [vmem:[%s3380_s6] ss:$0 sm:$0xff] }
 0x159   :  { %v1457_v59 = vpop.f32.mrf.mxu1 }
 0x15a   :  { %2029 = vmatprep.mubr.bf16.mxu0 %v1598_v60  ;;  %v1458_v14 = vadd.f32 %v1457_v59, %v268_v10 }
 0x15b   :  { %v1459_v62 = vpop.f32.mrf.mxu1  ;;  %2030 = vmatmul.mubr.bf16.vlgmr.msra.gmra.mxu0 %v1597_v61 }
 0x15c   :  { %2553 = vmatpush3.bf16.msra.mxu0 %v2969_v29 }
 0x15d   :  { %v1460_v63 = vpop.f32.mrf.mxu1  ;;  %2554 = vmatprep.subr.bf16.mxu0 %v2970_v30 }
 0x160   :  { %2555 = vmatpush3.bf16.msra.mxu0 %v2971_v34 }
 0x161   :  { %2556 = vmatprep.subr.bf16.mxu0 %v2972_v37 }
 0x164   :  { %2557 = vmatpush3.bf16.msra.mxu0 %v2973_v52 }
 0x165   :  { %2558 = vmatprep.subr.bf16.mxu0 %v2974_v40 }
 0x168   :  { %2559 = vmatpush3.bf16.msra.mxu0 %v2975_v19 }
 0x169   :  { %2560 = vmatprep.subr.bf16.mxu0 %v2976_v41 }
 0x16c   :  { %2561 = vmatpush3.bf16.msra.mxu0 %v2977_v42 }
 0x16d   :  { %2562 = vmatprep.subr.bf16.mxu0 %v2978_v43 }
 0x170   :  { %2563 = vmatpush3.bf16.msra.mxu0 %v2979_v36 }
 0x171   :  { %2564 = vmatprep.subr.bf16.mxu0 %v2980_v44 }
 0x174   :  { %2565 = vmatpush3.bf16.msra.mxu0 %v2981_v45 }
 0x175   :  { %2566 = vmatprep.subr.bf16.mxu0 %v2982_v46 }
 0x178   :  { %2567 = vmatpush3.bf16.msra.mxu0 %v2983_v47 }
 0x18e   :  { %v1496_v0 = vpop.f32.mrf.mxu0 }
 0x18f   :  { %v1497_v15 = vadd.f32 %v1496_v0, %v1456_v12 }
 0x190   :  { %v1498_v1 = vpop.f32.mrf.mxu0 }
 0x191   :  { %v1499_v18 = vadd.f32 %v1498_v1, %v1458_v14 }
 0x192   :  { %v1500_v3 = vpop.f32.mrf.mxu0 }
 0x194   :  { %v1501_v5 = vpop.f32.mrf.mxu0 }
 0x197   :  { %v1537_v7 = vpop.f32.mrf.mxu1 }
 0x198   :  { %v1538_v21 = vadd.f32 %v1537_v7, %v1497_v15 }
 0x199   :  { %v1539_v11 = vpop.f32.mrf.mxu1 }
 0x19a   :  { %v1540_v23 = vadd.f32 %v1539_v11, %v1499_v18 }
 0x19b   :  { %v1541_v13 = vpop.f32.mrf.mxu1 }
 0x19d   :  { %v1542_v17 = vpop.f32.mrf.mxu1 }
 0x19f   :  { %v1578_v22 = vpop.f32.mrf.mxu1 }
 0x1a0   :  { %v1579_v24 = vadd.f32 %v1578_v22, %v1538_v21 }
 0x1a1   :  { %v1580_v25 = vpop.f32.mrf.mxu1 }
 0x1a2   :  { %vm1587_vm3 = vcmp.gt.f32.partialorder %v1579_v24, 0.0  ;;  %v1591_v26 = vmul.f32 0.01, %v1579_v24  ;;  %v1581_v27 = vadd.f32 %v1580_v25, %v1540_v23 }
 0x1a3   :  { %v1582_v31 = vpop.f32.mrf.mxu1 }
 0x1a4   :  { %vm1588_vm4 = vcmp.gt.f32.partialorder %v1581_v27, 0.0  ;;  %v1592_v32 = vmul.f32 0.01, %v1581_v27  ;;  %v1595_v9 = vsel %vm1587_vm3, %v1579_v24, %v1591_v26 }
 0x1a5   :  { %v1583_v33 = vpop.f32.mrf.mxu1  ;;  %v1599_v16 = vpack.c.bf16 %v1595_v9, %v1595_v9 }
 0x1a6   :  { %v1596_v35 = vsel %vm1588_vm4, %v1581_v27, %v1592_v32 }
 0x1a7   :  { %v1600_v20 = vpack.c.bf16 %v1596_v35, %v1596_v35 }
 0x1a9   :  { %2070 = vmatprep.mubr.bf16.mxu1 %v1600_v20 }
 0x1aa   :  { %2071 = vmatmul.mubr.bf16.vlgmr.msra.gmra.mxu1 %v1599_v16 }
 0x21b   :  { %v2031_v48 = vpop.f32.mrf.mxu0 }
 0x21c   :  { %v2032_v56 = vadd.f32 %v2031_v48, %v1670_v54 }
 0x21d   :  { %v2033_v49 = vpop.f32.mrf.mxu0 }
 0x21e   :  { %v2034_v58 = vadd.f32 %v2033_v49, %v1674_v55 }
 0x21f   :  { %v2035_v50 = vpop.f32.mrf.mxu0 }
 0x221   :  { %v2036_v51 = vpop.f32.mrf.mxu0 }
 0x26a   :  { %v2072_v57 = vpop.f32.mrf.mxu1 }
 0x26b   :  { %v2073_v59 = vadd.f32 %v2072_v57, %v2032_v56 }
 0x26c   :  { %v2074_v60 = vpop.f32.mrf.mxu1 }
 0x26d   :  { %vm2079_vm5 = vcmp.gt.f32.partialorder %v2073_v59, 0.0  ;;  %v2081_v61 = vmul.f32 0.01, %v2073_v59  ;;  %v2075_v62 = vadd.f32 %v2074_v60, %v2034_v58 }
 0x26e   :  { %v2076_v63 = vpop.f32.mrf.mxu1 }
 0x26f   :  { %vm2080_vm6 = vcmp.gt.f32.partialorder %v2075_v62, 0.0  ;;  %v2082_v0 = vmul.f32 0.01, %v2075_v62  ;;  %v2083_v1 = vsel %vm2079_vm5, %v2073_v59, %v2081_v61 }
 0x270   :  { %v2077_v2 = vpop.f32.mrf.mxu1  ;;  %v2085_v5 = vpack.c.bf16 %v2083_v1, %v2083_v1 }
 0x271   :  { %v2084_v3 = vsel %vm2080_vm6, %v2075_v62, %v2082_v0 }
 0x272   :  { %v2086_v4 = vpack.c.bf16 %v2084_v3, %v2084_v3 }
 0x274   :  { %2254 = vmatprep.mubr.bf16.mxu0 %v2086_v4 }
 0x275   :  { %2255 = vmatmul.mubr.bf16.vlgmr.msra.gmra.mxu0 %v2085_v5 }
 0x335   :  { %v2568_v38 = vpop.f32.mrf.mxu0 }
 0x337   :  { %v2569_v8 = vpop.f32.mrf.mxu0 }
 0x338   :  { %v2570_v6 = vadd.f32 %v2569_v8, %v2568_v38 }
 0x339   :  { %v2571_v7 = vpop.f32.mrf.mxu0 }
 0x33a   :  { %v2257_v10 = vadd.f32 %v2570_v6, %v2535_v39 }
 0x33b   :  { %v2572_v11 = vpop.f32.mrf.mxu0 }
 0x33c   :  { %v2262_v12 = vmul.f32 0.5, %v2257_v10 }
 0x33e   :  { %2984 = vtanh.f32 %v2262_v12 }
 0x34b   :  { %v2985_v13 = vpop.eup %2984 }
 0x34c   :  { %v2264_v14 = vadd.f32 1.0, %v2985_v13 }
 0x34e   :  { %v2265_v15 = vmul.f32 0.5, %v2264_v14 }
 0x350   :  { %2267 = vst.msk [vmem:[%s3381_s7] sm:$0xff] %vm2266_vm7, %v2265_v15 }
 0x351   :  { %2272 = vsyncpa [#allocation3], 1 }

</bundles_post_ra>
